<compile_context>
chip_gen: v7x
topology: tpu7x:2x2x1
jax: 0.10.0
libtpu: 0.0.40
codegen_flags: <defaults>
</compile_context>

<pallas_src>
import math

import jax
import jax.numpy as jnp
import numpy as np
from jax.experimental import pallas as pl
from jax.experimental.pallas import tpu as pltpu


# ---------------------------------------------------------------------------
# Fused kernel: one batch element per grid step
# ---------------------------------------------------------------------------
def _fused_scatter_kernel(J: int, d: int):
    """Kernel body factory.  d = out_d (== in_d for the sc2 stage, as in torch)."""

    def kernel(x_ref, w1_ref, adjs_ref, pb1_ref, w2bd_ref, pb2_ref, o_ref):
        # x_ref    : (n, d_in)
        # w1_ref   : (d_in, (1+J)*d)   [ W_gcn | W_sc1_0 | ... | W_sc1_{J-1} ]
        # adjs_ref : (1+J, n, n)       [ att*mask | sca_0 | ... | sca_{J-1} ]
        # pb1_ref  : (n, (1+J)*d)      hoisted post-adjacency bias per operator
        # w2bd_ref : (J, J*d, J*d)     blockdiag(W_sc2[j2]) repeated J times
        # pb2_ref  : (J, n, J*d)       hoisted sc2 bias, tiled over j1 blocks
        # o_ref    : (n, (1+J*J)*d)    [ conv | j2=0:(j1 blocks) | j2=1:(...) ]
        x = x_ref[...]

        # --- stage 1: one wide GEMM feeds the conv tap and all sc1 taps
        s1 = jnp.dot(x, w1_ref[...], preferred_element_type=jnp.float32)

        # conv tap:  att_m @ (x @ W_gcn) + rowsum(att_m) ⊗ b_gcn
        y_conv = (jnp.dot(adjs_ref[0], s1[:, :d],
                          preferred_element_type=jnp.float32)
                  + pb1_ref[:, :d])

        # sc1 taps with fused tanh, packed lane-dense into H = (n, J*d)
        h_blocks = []
        for j in range(J):
            lo = (1 + j) * d
            hj = (jnp.dot(adjs_ref[1 + j], s1[:, lo:lo + d],
                          preferred_element_type=jnp.float32)
                  + pb1_ref[:, lo:lo + d])
            h_blocks.append(jnp.tanh(hj))
        h = jnp.concatenate(h_blocks, axis=-1)                    # (n, J*d)

        # --- stage 2: per wavelet j2, ONE wide GEMM pair covers all j1 taps
        out_blocks = [y_conv]
        for j2 in range(J):
            s2 = jnp.dot(h, w2bd_ref[j2], preferred_element_type=jnp.float32)
            o2 = (jnp.dot(adjs_ref[1 + j2], s2,
                          preferred_element_type=jnp.float32)
                  + pb2_ref[j2])                                   # (n, J*d)
            out_blocks.append(o2)

        # single lane-dense store of the whole per-node output slab
        o_ref[...] = jnp.concatenate(out_blocks, axis=-1).astype(o_ref.dtype)

    return kernel


# ---------------------------------------------------------------------------
# Glue (small O(J * n^3) preprocessing, kept in plain JAX)
# ---------------------------------------------------------------------------
def diff_wavelets(W, J, node_n, f_coef):
    I = jnp.eye(node_n, dtype=W.dtype)
    A = W / (jnp.linalg.norm(W) + 0.001)          # frobenius norm (+ detach: no-op fwd)
    P = 0.5 * (I + A)
    H = ((1.0 + f_coef[0]) * I - (1.0 - f_coef[1]) * P)[None]
    powerP = P
    for j in range(1, J):
        if j == 1:
            powerP = P
        else:
            powerP = powerP @ powerP
        thisH = powerP @ ((1.0 + f_coef[2 * j]) * I
                          - (1.0 - f_coef[2 * j + 1]) * powerP)
        H = jnp.concatenate([H, thisH[None]], axis=0)
    return H


def graph_lap(A, normalize=True):
    d = jnp.sum(A, axis=-1)
    D = jnp.diag(d)
    L = D - A
    if normalize:
        d_ = 1.0 / jnp.sqrt(d + 0.0001)
        D_ = jnp.diag(d_)
        L = D_ @ (L @ D_)
    return L


# ---------------------------------------------------------------------------
# Forward wrapper: mirrors GraphConvScatter.forward with a single fused launch
# ---------------------------------------------------------------------------
def graph_conv_scatter_forward(params, x, att, mask, J):
    att_m = att * mask
    n = att_m.shape[0]
    sca = diff_wavelets(att_m, J, n, params["f_coef"])          # (J, n, n)
    _ = graph_lap(att_m)   # computed for parity with the module; unused downstream
    # TODO(synk): torch forward's debug print(x.shape, att.shape, L.shape) omitted.

    b, _, d_in = x.shape
    d = params["gcn_w"].shape[-1]                               # out_d
    Jd = J * d
    C = (1 + J * J) * d

    # --- tiny per-call preprocessing (plain JAX) ----------------------------
    adjs = jnp.concatenate([att_m[None], sca], axis=0)          # (1+J, n, n)

    w1_all = jnp.transpose(
        jnp.concatenate([params["gcn_w"], params["sc1_w"]], axis=0),
        (1, 0, 2)).reshape(d_in, (1 + J) * d)                   # (d_in, (1+J)d)

    b1 = jnp.concatenate([params["gcn_b"], params["sc1_b"]], axis=0)   # (1+J, d)
    rows1 = jnp.sum(adjs, axis=-1)                              # (1+J, n)
    pb1 = jnp.transpose(rows1[:, :, None] * b1[:, None, :],
                        (1, 0, 2)).reshape(n, (1 + J) * d)      # (n, (1+J)d)

    # block-diagonal second-stage weights:  H(n,J*d) @ blockdiag(W2[j2])
    eyeJ = jnp.eye(J, dtype=x.dtype)
    w2bd = jax.vmap(lambda W: jnp.kron(eyeJ, W))(params["sc2_w"])      # (J, Jd, Jd)

    rows2 = jnp.sum(sca, axis=-1)                               # (J, n)
    pb2 = jnp.tile(rows2[:, :, None] * params["sc2_b"][:, None, :],
                   (1, 1, J))                                   # (J, n, Jd)

    # --- advisory cost estimate ---------------------------------------------
    flops = b * (2 * n * d_in * (1 + J) * d
                 + (1 + J) * 2 * n * n * d
                 + J * (2 * n * Jd * Jd + 2 * n * n * Jd))
    bytes_accessed = 4 * (b * n * d_in + d_in * (1 + J) * d + (1 + J) * n * n
                          + n * (1 + J) * d + J * Jd * Jd + J * n * Jd
                          + b * n * C)
    cost = pl.CostEstimate(flops=flops, transcendentals=b * J * n * d,
                           bytes_accessed=bytes_accessed)

    out = pl.pallas_call(
        _fused_scatter_kernel(J, d),
        out_shape=jax.ShapeDtypeStruct((b, n, C), x.dtype),
        grid_spec=pl.GridSpec(
            grid=(b,),
            in_specs=[
                pl.BlockSpec((None, n, d_in), lambda bi: (bi, 0, 0)),
                pl.BlockSpec((d_in, (1 + J) * d), lambda bi: (0, 0)),
                pl.BlockSpec((1 + J, n, n), lambda bi: (0, 0, 0)),
                pl.BlockSpec((n, (1 + J) * d), lambda bi: (0, 0)),
                pl.BlockSpec((J, Jd, Jd), lambda bi: (0, 0, 0)),
                pl.BlockSpec((J, n, Jd), lambda bi: (0, 0, 0)),
            ],
            out_specs=pl.BlockSpec((None, n, C), lambda bi: (bi, 0, 0)),
        ),
        compiler_params=pltpu.CompilerParams(
            dimension_semantics=("parallel",)),   # batch axis -> both TCs on v7x
        cost_estimate=cost,
    )(x, w1_all, adjs, pb1, w2bd, pb2)                          # (b, n, C)

    # --- unpack lane-dense slab into (b, 1 + J*J, n, d) ----------------------
    y_conv = out[:, :, :d][:, None]                             # (b, 1, n, d)
    y_scat = out[:, :, d:].reshape(b, n, J, J, d)               # (b, n, j2, j1, d)
    y_scat = jnp.transpose(y_scat, (0, 3, 2, 1, 4)).reshape(b, J * J, n, d)
    return jnp.concatenate([y_conv, y_scat], axis=1)            # (b, 1+J*J, n, d)


# ---------------------------------------------------------------------------
# Pure-JAX reference (einsum, mirrors the torch code) for a correctness check
# ---------------------------------------------------------------------------
def _graph_operate_ref(x, weight, bias, adj):
    support = jnp.einsum('bkwd,jdf->bkwjf', x, weight) + bias
    support = jnp.swapaxes(support, 2, 3)                        # (b,k,j,w,f)
    out = jnp.einsum('jvw,bkjwf->bkjvf', adj, support)
    b, k, j, v, d = out.shape
    return out.reshape(b, k * j, v, d)


def _forward_ref(params, x, att, mask, J):
    att_m = att * mask
    sca = diff_wavelets(att_m, J, att_m.shape[0], params["f_coef"])
    x = x[:, None]
    y_conv = _graph_operate_ref(x, params["gcn_w"], params["gcn_b"], att_m[None])
    y_scat = jnp.tanh(_graph_operate_ref(x, params["sc1_w"], params["sc1_b"], sca))
    y_scat = _graph_operate_ref(y_scat, params["sc2_w"], params["sc2_b"], sca)
    return jnp.concatenate([y_conv, y_scat], axis=1)


# ---------------------------------------------------------------------------
# Deterministic parameter init (shapes from GraphConvScatter.__init__)
# ---------------------------------------------------------------------------
def init_params(key, in_d, out_d, J):
    ks = jax.random.split(key, 7)
    bound = 1.0 / math.sqrt(in_d * out_d)

    def xavier_w(k, j):
        # torch xavier_normal_ on (j, in_d, out_d): fan_in=in_d*out_d, fan_out=j*out_d
        std = math.sqrt(2.0 / (in_d * out_d + j * out_d))
        return std * jax.random.normal(k, (j, in_d, out_d), jnp.float32)

    def unif_b(k, j):
        return jax.random.uniform(k, (j, out_d), jnp.float32, -bound, bound)

    return {
        "gcn_w": xavier_w(ks[0], 1), "gcn_b": unif_b(ks[1], 1),
        "sc1_w": xavier_w(ks[2], J), "sc1_b": unif_b(ks[3], J),
        "sc2_w": xavier_w(ks[4], J), "sc2_b": unif_b(ks[5], J),
        "f_coef": jax.random.uniform(ks[6], (J * 2,), jnp.float32) * 0.0001,
    }


if __name__ == "__main__":
    # NOTE: feat_sc2 consumes feat_sc1's output, so (as in the torch module) it
    # only type-checks when in_d == out_d.
    batch, node_n, in_d, out_d, J = 2, 48, 16, 16, 2

    key = jax.random.PRNGKey(0)
    k_x, k_att, k_mask, k_p = jax.random.split(key, 4)

    x = jax.random.normal(k_x, (batch, node_n, in_d), jnp.float32)
    att = jax.random.normal(k_att, (node_n, node_n), jnp.float32)
    mask = (jax.random.uniform(k_mask, (node_n, node_n)) > 0.2).astype(jnp.float32)
    params = init_params(k_p, in_d, out_d, J)

    fwd = jax.jit(graph_conv_scatter_forward, static_argnums=(4,))
    y = jax.block_until_ready(fwd(params, x, att, mask, J))
    assert y.shape == (batch, 1 + J * J, node_n, out_d), y.shape

    y_ref = jax.block_until_ready(_forward_ref(params, x, att, mask, J))
    np.testing.assert_allclose(np.asarray(y), np.asarray(y_ref),
                               rtol=1e-4, atol=1e-4)

    print("KERNEL_OK")
</pallas_src>

<mosaic_0001>
module attributes {stable_mosaic.version = 11 : i64} {
  func.func @kernel(%arg0: i32, %arg1: memref<1x48x16xf32, #tpu.memory_space<vmem>>, %arg2: memref<16x48xf32, #tpu.memory_space<vmem>>, %arg3: memref<3x48x48xf32, #tpu.memory_space<vmem>>, %arg4: memref<48x48xf32, #tpu.memory_space<vmem>>, %arg5: memref<2x32x32xf32, #tpu.memory_space<vmem>>, %arg6: memref<2x48x32xf32, #tpu.memory_space<vmem>>, %arg7: memref<1x48x80xf32, #tpu.memory_space<vmem>>) attributes {dimension_semantics = [#tpu.dimension_semantics<parallel>], iteration_bounds = array<i64: 2>, scalar_prefetch = 0 : i64, scratch_operands = 0 : i64, tpu.core_type = #tpu.core_type<tc>, window_params = [{transform_indices = @transform_0, window_bounds = array<i64: 1, 48, 16>}, {pipeline_mode = #tpu.pipeline_mode<synchronous>, transform_indices = @transform_1, window_bounds = array<i64: 16, 48>}, {pipeline_mode = #tpu.pipeline_mode<synchronous>, transform_indices = @transform_2, window_bounds = array<i64: 3, 48, 48>}, {pipeline_mode = #tpu.pipeline_mode<synchronous>, transform_indices = @transform_3, window_bounds = array<i64: 48, 48>}, {pipeline_mode = #tpu.pipeline_mode<synchronous>, transform_indices = @transform_4, window_bounds = array<i64: 2, 32, 32>}, {pipeline_mode = #tpu.pipeline_mode<synchronous>, transform_indices = @transform_5, window_bounds = array<i64: 2, 48, 32>}, {transform_indices = @transform_6, window_bounds = array<i64: 1, 48, 80>}]} {
    %c0 = arith.constant 0 : index
    %c0_0 = arith.constant 0 : index
    %c0_1 = arith.constant 0 : index
    %0 = vector.load %arg1[%c0, %c0_0, %c0_1] : memref<1x48x16xf32, #tpu.memory_space<vmem>>, vector<1x48x16xf32>
    %1 = vector.shape_cast %0 : vector<1x48x16xf32> to vector<48x16xf32>
    %c0_2 = arith.constant 0 : index
    %c0_3 = arith.constant 0 : index
    %2 = vector.load %arg2[%c0_2, %c0_3] : memref<16x48xf32, #tpu.memory_space<vmem>>, vector<16x48xf32>
    %cst = arith.constant dense<0.000000e+00> : vector<48x48xf32>
    %3 = tpu.matmul %1, %2, %cst {dimension_numbers = #tpu.dot_dimension_numbers<[1], [0], [0], [1], [0, 0, 1, 1], [], []>} : vector<48x16xf32>, vector<16x48xf32>, vector<48x48xf32> -> vector<48x48xf32>
    %c0_4 = arith.constant 0 : index
    %c0_5 = arith.constant 0 : index
    %c0_6 = arith.constant 0 : index
    %4 = vector.load %arg3[%c0_4, %c0_5, %c0_6] : memref<3x48x48xf32, #tpu.memory_space<vmem>>, vector<1x48x48xf32>
    %5 = vector.shape_cast %4 : vector<1x48x48xf32> to vector<48x48xf32>
    %6 = vector.extract_strided_slice %3 {offsets = [0, 0], sizes = [48, 16], strides = [1, 1]} : vector<48x48xf32> to vector<48x16xf32>
    %cst_7 = arith.constant dense<0.000000e+00> : vector<48x16xf32>
    %7 = tpu.matmul %5, %6, %cst_7 {dimension_numbers = #tpu.dot_dimension_numbers<[1], [0], [0], [1], [0, 0, 1, 1], [], []>} : vector<48x48xf32>, vector<48x16xf32>, vector<48x16xf32> -> vector<48x16xf32>
    %c0_8 = arith.constant 0 : index
    %c0_9 = arith.constant 0 : index
    %8 = vector.load %arg4[%c0_8, %c0_9] : memref<48x48xf32, #tpu.memory_space<vmem>>, vector<48x16xf32>
    %9 = arith.addf %7, %8 : vector<48x16xf32>
    %c1 = arith.constant 1 : index
    %c0_10 = arith.constant 0 : index
    %c0_11 = arith.constant 0 : index
    %10 = vector.load %arg3[%c1, %c0_10, %c0_11] : memref<3x48x48xf32, #tpu.memory_space<vmem>>, vector<1x48x48xf32>
    %11 = vector.shape_cast %10 : vector<1x48x48xf32> to vector<48x48xf32>
    %12 = vector.extract_strided_slice %3 {offsets = [0, 16], sizes = [48, 16], strides = [1, 1]} : vector<48x48xf32> to vector<48x16xf32>
    %cst_12 = arith.constant dense<0.000000e+00> : vector<48x16xf32>
    %13 = tpu.matmul %11, %12, %cst_12 {dimension_numbers = #tpu.dot_dimension_numbers<[1], [0], [0], [1], [0, 0, 1, 1], [], []>} : vector<48x48xf32>, vector<48x16xf32>, vector<48x16xf32> -> vector<48x16xf32>
    %c0_13 = arith.constant 0 : index
    %c16 = arith.constant 16 : index
    %14 = vector.load %arg4[%c0_13, %c16] : memref<48x48xf32, #tpu.memory_space<vmem>>, vector<48x16xf32>
    %15 = arith.addf %13, %14 : vector<48x16xf32>
    %16 = math.tanh %15 : vector<48x16xf32>
    %c2 = arith.constant 2 : index
    %c0_14 = arith.constant 0 : index
    %c0_15 = arith.constant 0 : index
    %17 = vector.load %arg3[%c2, %c0_14, %c0_15] : memref<3x48x48xf32, #tpu.memory_space<vmem>>, vector<1x48x48xf32>
    %18 = vector.shape_cast %17 : vector<1x48x48xf32> to vector<48x48xf32>
    %19 = vector.extract_strided_slice %3 {offsets = [0, 32], sizes = [48, 16], strides = [1, 1]} : vector<48x48xf32> to vector<48x16xf32>
    %cst_16 = arith.constant dense<0.000000e+00> : vector<48x16xf32>
    %20 = tpu.matmul %18, %19, %cst_16 {dimension_numbers = #tpu.dot_dimension_numbers<[1], [0], [0], [1], [0, 0, 1, 1], [], []>} : vector<48x48xf32>, vector<48x16xf32>, vector<48x16xf32> -> vector<48x16xf32>
    %c0_17 = arith.constant 0 : index
    %c32 = arith.constant 32 : index
    %21 = vector.load %arg4[%c0_17, %c32] : memref<48x48xf32, #tpu.memory_space<vmem>>, vector<48x16xf32>
    %22 = arith.addf %20, %21 : vector<48x16xf32>
    %23 = math.tanh %22 : vector<48x16xf32>
    %24 = tpu.concatenate %16, %23 in 1 : vector<48x16xf32>, vector<48x16xf32> -> vector<48x32xf32>
    %c0_18 = arith.constant 0 : index
    %c0_19 = arith.constant 0 : index
    %c0_20 = arith.constant 0 : index
    %25 = vector.load %arg5[%c0_18, %c0_19, %c0_20] : memref<2x32x32xf32, #tpu.memory_space<vmem>>, vector<1x32x32xf32>
    %26 = vector.shape_cast %25 : vector<1x32x32xf32> to vector<32x32xf32>
    %cst_21 = arith.constant dense<0.000000e+00> : vector<48x32xf32>
    %27 = tpu.matmul %24, %26, %cst_21 {dimension_numbers = #tpu.dot_dimension_numbers<[1], [0], [0], [1], [0, 0, 1, 1], [], []>} : vector<48x32xf32>, vector<32x32xf32>, vector<48x32xf32> -> vector<48x32xf32>
    %c1_22 = arith.constant 1 : index
    %c0_23 = arith.constant 0 : index
    %c0_24 = arith.constant 0 : index
    %28 = vector.load %arg3[%c1_22, %c0_23, %c0_24] : memref<3x48x48xf32, #tpu.memory_space<vmem>>, vector<1x48x48xf32>
    %29 = vector.shape_cast %28 : vector<1x48x48xf32> to vector<48x48xf32>
    %cst_25 = arith.constant dense<0.000000e+00> : vector<48x32xf32>
    %30 = tpu.matmul %29, %27, %cst_25 {dimension_numbers = #tpu.dot_dimension_numbers<[1], [0], [0], [1], [0, 0, 1, 1], [], []>} : vector<48x48xf32>, vector<48x32xf32>, vector<48x32xf32> -> vector<48x32xf32>
    %c0_26 = arith.constant 0 : index
    %c0_27 = arith.constant 0 : index
    %c0_28 = arith.constant 0 : index
    %31 = vector.load %arg6[%c0_26, %c0_27, %c0_28] : memref<2x48x32xf32, #tpu.memory_space<vmem>>, vector<1x48x32xf32>
    %32 = vector.shape_cast %31 : vector<1x48x32xf32> to vector<48x32xf32>
    %33 = arith.addf %30, %32 : vector<48x32xf32>
    %c1_29 = arith.constant 1 : index
    %c0_30 = arith.constant 0 : index
    %c0_31 = arith.constant 0 : index
    %34 = vector.load %arg5[%c1_29, %c0_30, %c0_31] : memref<2x32x32xf32, #tpu.memory_space<vmem>>, vector<1x32x32xf32>
    %35 = vector.shape_cast %34 : vector<1x32x32xf32> to vector<32x32xf32>
    %cst_32 = arith.constant dense<0.000000e+00> : vector<48x32xf32>
    %36 = tpu.matmul %24, %35, %cst_32 {dimension_numbers = #tpu.dot_dimension_numbers<[1], [0], [0], [1], [0, 0, 1, 1], [], []>} : vector<48x32xf32>, vector<32x32xf32>, vector<48x32xf32> -> vector<48x32xf32>
    %c2_33 = arith.constant 2 : index
    %c0_34 = arith.constant 0 : index
    %c0_35 = arith.constant 0 : index
    %37 = vector.load %arg3[%c2_33, %c0_34, %c0_35] : memref<3x48x48xf32, #tpu.memory_space<vmem>>, vector<1x48x48xf32>
    %38 = vector.shape_cast %37 : vector<1x48x48xf32> to vector<48x48xf32>
    %cst_36 = arith.constant dense<0.000000e+00> : vector<48x32xf32>
    %39 = tpu.matmul %38, %36, %cst_36 {dimension_numbers = #tpu.dot_dimension_numbers<[1], [0], [0], [1], [0, 0, 1, 1], [], []>} : vector<48x48xf32>, vector<48x32xf32>, vector<48x32xf32> -> vector<48x32xf32>
    %c1_37 = arith.constant 1 : index
    %c0_38 = arith.constant 0 : index
    %c0_39 = arith.constant 0 : index
    %40 = vector.load %arg6[%c1_37, %c0_38, %c0_39] : memref<2x48x32xf32, #tpu.memory_space<vmem>>, vector<1x48x32xf32>
    %41 = vector.shape_cast %40 : vector<1x48x32xf32> to vector<48x32xf32>
    %42 = arith.addf %39, %41 : vector<48x32xf32>
    %43 = tpu.concatenate %9, %33, %42 in 1 : vector<48x16xf32>, vector<48x32xf32>, vector<48x32xf32> -> vector<48x80xf32>
    %c0_40 = arith.constant 0 : index
    %c0_41 = arith.constant 0 : index
    %c0_42 = arith.constant 0 : index
    %44 = vector.load %arg7[%c0_40, %c0_41, %c0_42] : memref<1x48x80xf32, #tpu.memory_space<vmem>>, vector<1x48x80xf32>
    %45 = vector.shape_cast %44 : vector<1x48x80xf32> to vector<48x80xf32>
    %46 = vector.shape_cast %43 : vector<48x80xf32> to vector<1x48x80xf32>
    tpu.vector_store %arg7[%c0_40, %c0_41, %c0_42], %46 {strides = array<i32>} : memref<1x48x80xf32, #tpu.memory_space<vmem>>, vector<1x48x80xf32>,
    return
  }
  func.func @transform_0(%arg0: i32) -> (i32, i32, i32) {
    %c0_i32 = arith.constant 0 : i32
    %c0_i32_0 = arith.constant 0 : i32
    %c0_i32_1 = arith.constant 0 : i32
    return %arg0, %c0_i32, %c0_i32_0 : i32, i32, i32
  }
  func.func @transform_1(%arg0: i32) -> (i32, i32) {
    %c0_i32 = arith.constant 0 : i32
    %c0_i32_0 = arith.constant 0 : i32
    %c0_i32_1 = arith.constant 0 : i32
    return %c0_i32, %c0_i32_0 : i32, i32
  }
  func.func @transform_2(%arg0: i32) -> (i32, i32, i32) {
    %c0_i32 = arith.constant 0 : i32
    %c0_i32_0 = arith.constant 0 : i32
    %c0_i32_1 = arith.constant 0 : i32
    %c0_i32_2 = arith.constant 0 : i32
    return %c0_i32, %c0_i32_0, %c0_i32_1 : i32, i32, i32
  }
  func.func @transform_3(%arg0: i32) -> (i32, i32) {
    %c0_i32 = arith.constant 0 : i32
    %c0_i32_0 = arith.constant 0 : i32
    %c0_i32_1 = arith.constant 0 : i32
    return %c0_i32, %c0_i32_0 : i32, i32
  }
  func.func @transform_4(%arg0: i32) -> (i32, i32, i32) {
    %c0_i32 = arith.constant 0 : i32
    %c0_i32_0 = arith.constant 0 : i32
    %c0_i32_1 = arith.constant 0 : i32
    %c0_i32_2 = arith.constant 0 : i32
    return %c0_i32, %c0_i32_0, %c0_i32_1 : i32, i32, i32
  }
  func.func @transform_5(%arg0: i32) -> (i32, i32, i32) {
    %c0_i32 = arith.constant 0 : i32
    %c0_i32_0 = arith.constant 0 : i32
    %c0_i32_1 = arith.constant 0 : i32
    %c0_i32_2 = arith.constant 0 : i32
    return %c0_i32, %c0_i32_0, %c0_i32_1 : i32, i32, i32
  }
  func.func @transform_6(%arg0: i32) -> (i32, i32, i32) {
    %c0_i32 = arith.constant 0 : i32
    %c0_i32_0 = arith.constant 0 : i32
    %c0_i32_1 = arith.constant 0 : i32
    return %arg0, %c0_i32, %c0_i32_0 : i32, i32, i32
  }
}

</mosaic_0001>

<bundles_post_ra>
// kernel: graph_conv_scatter_forward.1
= control target key start
LH: loop header
LB: loop body
LE: loop exit
PB: predicated region body
PF: predicated region fallthrough
CT: control target
= control target key end

     0   :  { %s1928_s21 = smov 0   ;;  %s2292_s0 = inlined_call_operand.vmem [shape: f32[2,48,16], index: 0, kind: input, shape index: {}]   ;;  %s2293_s1 = inlined_call_operand.vmem [shape: f32[16,48], index: 1, kind: input, shape index: {}]   ;;  %s2294_s2 = inlined_call_operand.vmem [shape: f32[3,48,48], index: 2, kind: input, shape index: {}]   ;;  %s2295_s3 = inlined_call_operand.vmem [shape: f32[48,48], index: 3, kind: input, shape index: {}]   ;;  %s2296_s4 = inlined_call_operand.vmem [shape: f32[2,32,32], index: 4, kind: input, shape index: {}]   ;;  %s2297_s5 = inlined_call_operand.vmem [shape: f32[2,48,32], index: 5, kind: input, shape index: {}]   ;;  %s2298_s6 = inlined_call_operand.vmem [shape: f32[2,48,80], index: 6, kind: output, shape index: {}]  }
   0x1 LB: > { %s1409_s22 = sadd.s32 4294967295, %s1887_s21   ;;  %p1413_p0 = scmp.ge.s32.totalorder %s1887_s21, 1  ;;  %s1887_s21 = sphi %s1928_s21, %s16_s21  }
   0x2   : > { %p212_p1 = scmp.lt.s32.totalorder %s1887_s21, 3 }
   0x4   : > { %p213_p2 = pnand %p1413_p0, %p212_p1 }
   0x5   : > { %v258_v0 = vld [vmem:[%s2293_s1] sm:$0xff] (!%p213_p2)  ;;  %v259_v1 = vld [vmem:[%s2293_s1 + $0x8] sm:$0xff] (!%p213_p2)  ;;  %p242_p3 = scmp.lt.s32.totalorder (!%p213_p2), %s1409_s22, 1  ;;  %vm260_vm0 = vcmask (!%p213_p2), 130048   ;;  %vm386_vm1 = vcmask (!%p213_p2), 392192   ;;  %s1889_s9 = smov (!%p213_p2), 96  }
   0x6   : > { %216 = sbr.rel (%p213_p2) target bundleno = 1287 (0x507), region = 44  ;;  %v1728_v2 = vpack.c.bf16 (!%p213_p2), %v259_v1, %v258_v0  ;;  %v374_v9 = vld [vmem:[%s2294_s2] sm:$0xff] (!%p213_p2)  ;;  %s1890_s10 = smov (!%p213_p2), 112   ;;  %v375_v22 = vld [vmem:[%s2294_s2 + $0x8] sm:$0xff] (!%p213_p2)  ;;  %v376_v23 = vld [vmem:[%s2294_s2 + $0x10] sm:$0xff] (!%p213_p2)  ;;  %vm870_vm2 = vcmask (!%p213_p2), 261120  }
   0x7   : > { %1601 = vmatprep.mubr.msk.f32.mxu1 (!%p213_p2), %vm386_vm1, %v374_v9  ;;  %v1974_v24 = vld [vmem:[%s2295_s3] sm:$0xff] (!%p213_p2)  ;;  %v377_v25 = vld [vmem:[%s2294_s2 + $0x18] sm:$0xff] (!%p213_p2)  ;;  %v1986_v26 = vld [vmem:[%s2295_s3 + $0x10] sm:$0xff] (!%p213_p2)  ;;  %s1892_s13 = smov (!%p213_p2), 48   ;;  %vm1347_vm3 = vcmask (!%p213_p2), 654336  }
   0x8   : > { %1729 = vmatprep.subr.bf16.mxu0 (!%p213_p2), %v1728_v2  ;;  %v1991_v27 = vld [vmem:[%s2294_s2 + $0x30] sm:$0xff] (!%p213_p2)  ;;  %v378_v28 = vld [vmem:[%s2294_s2 + $0x20] sm:$0xff] (!%p213_p2)  ;;  %v2003_v29 = vld [vmem:[%s2295_s3 + $0x8] sm:$0xff] (!%p213_p2) }
   0x9   : > { %1731 = vmatpush3.bf16.msra.mxu0 (!%p213_p2), %v1728_v2  ;;  %v379_v30 = vld [vmem:[%s2294_s2 + $0x28] sm:$0xff] (!%p213_p2)  ;;  %v2014_v31 = vld [vmem:[%s2295_s3 + $0x20] sm:$0xff] (!%p213_p2)  ;;  %v2027_v33 = vld [vmem:[%s2295_s3 + $0x18] sm:$0xff] (!%p213_p2) }
   0xa   : > { %v2019_v32 = vld [vmem:[%s2294_s2 + $0x60] sm:$0xff] (!%p213_p2)  ;;  %v2038_v34 = vld [vmem:[%s2295_s3 + $0x28] sm:$0xff] (!%p213_p2)  ;;  %v2062_v55 = vld [vmem:[%s2294_s2 + $0x70] sm:$0xff] (!%p213_p2) }
   0xb   : > { %v2057_v53 = vld [vmem:[%s2294_s2 + $0x68] sm:$0xff] (!%p213_p2)  ;;  %v2071_v60 = vld [vmem:[%s2294_s2 + $0x78] sm:$0xff] (!%p213_p2)  ;;  %v2076_v61 = vld [vmem:[%s2294_s2 + $0x80] sm:$0xff] (!%p213_p2) }
   0xc   : > { %v2085_v63 = vld [vmem:[%s2294_s2 + $0x88] sm:$0xff] (!%p213_p2)  ;;  %v2092_v0 = vld [vmem:[%s2294_s2 + $0x38] sm:$0xff] (!%p213_p2)  ;;  %v2099_v1 = vld [vmem:[%s2294_s2 + $0x40] sm:$0xff] (!%p213_p2) }
   0xd   : > { %s2300_s22 = smov (!%p242_p3, %s1409_s22), 1  ;;  %v2108_v2 = vld [vmem:[%s2294_s2 + $0x48] sm:$0xff] }
   0xe   : > { %s1814_s27 = smul.u32 48, %s2300_s22 }
  0x10   : > { %s246_s30 = scalar_lea.vmem %s2292_s0, %s1814_s27 }
  0x11   : > { %v252_v3 = vld [vmem:[%s246_s30] sm:$0xff]  ;;  %v253_v4 = vld [vmem:[%s246_s30 + $0x8] sm:$0xff]  ;;  %v254_v5 = vld [vmem:[%s246_s30 + $0x10] sm:$0xff] }
  0x12   : > { %1580 = vmatprep.mubr.msk.f32.mxu0 %vm260_vm0, %v252_v3  ;;  %v255_v6 = vld [vmem:[%s246_s30 + $0x18] sm:$0xff]  ;;  %v256_v7 = vld [vmem:[%s246_s30 + $0x20] sm:$0xff]  ;;  %v257_v8 = vld [vmem:[%s246_s30 + $0x28] sm:$0xff]  ;;  %s1891_s30 = smov 16  }
  0x13   : > { %1581 = vmatmul.mubr.msk.f32.vlgmr.msra.gmra.mrb[0].mxu0 %vm260_vm0, %v253_v4  ;;  %v2113_v3 = vld [vmem:[%s2294_s2 + $0x50] sm:$0xff]  ;;  %v2122_v4 = vld [vmem:[%s2294_s2 + $0x58] sm:$0xff] }
  0x14   : > { %1583 = vmatprep.mubr.msk.f32.mxu0 %vm260_vm0, %v254_v5 }
  0x17   : > { %1584 = vmatmul.mubr.msk.f32.gmra.mrb[2].mxu0 %vm260_vm0, %v255_v6 }
  0x18   : > { %1586 = vmatprep.mubr.msk.f32.mxu0 %vm260_vm0, %v256_v7 }
  0x1b   : > { %1587 = vmatmul.mubr.msk.f32.gmra.mrb[4].mxu0 %vm260_vm0, %v257_v8 }
  0x1c   : > { %1622 = vmatprep.mubr.msk.f32.mxu0 %vm386_vm1, %v1991_v27 }
  0xe6   : > { %v1582_v10 = vpop.f32.mrb[0].mxu0 }
  0xe7   : > { %v345_v11 = vpop.f32.mrb[1].mxu0 }
  0xe8   : > { %v1842_v12 = vpack.i.bf16 %v1582_v10, %v345_v11  ;;  %v1732_v13 = vpack.c.bf16 %v1582_v10, %v345_v11  ;;  %v866_v11 = vld [vmem:[%s2296_s4] sm:$0xff] }
  0xea   : > { %1828 = vrot.lane.b32.xlu0 %v1842_v12, %s1889_s9  ;;  %v1585_v14 = vpop.f32.mrb[2].mxu0  ;;  %1733 = vmatprep.subr.bf16.mxu1 %v1732_v13 }
  0xeb   : > { %v355_v15 = vpop.f32.mrb[3].mxu0  ;;  %1735 = vmatpush3.bf16.msra.mxu1 %v1732_v13 }
  0xec   : > { %v1847_v16 = vpack.i.bf16 %v1585_v14, %v355_v15  ;;  %v1736_v17 = vpack.c.bf16 %v1585_v14, %v355_v15  ;;  %v868_v14 = vld [vmem:[%s2296_s4 + $0x10] sm:$0xff]  ;;  %v869_v15 = vld [vmem:[%s2296_s4 + $0x18] sm:$0xff] }
  0xee   : > { %1833 = vrot.lane.b32.xlu0 %v1847_v16, %s1889_s9  ;;  %v1588_v18 = vpop.f32.mrb[4].mxu0  ;;  %1737 = vmatprep.subr.bf16.mxu1 %v1736_v17 }
  0xef   : > { %v365_v19 = vpop.f32.mrb[5].mxu0  ;;  %1739 = vmatpush3.bf16.msra.mxu1 %v1736_v17 }
  0xf0   : > { %v1852_v20 = vpack.i.bf16 %v1588_v18, %v365_v19  ;;  %v1740_v21 = vpack.c.bf16 %v1588_v18, %v365_v19 }
  0xf2   : > { %1848 = vrot.lane.b32.xlu0 %v1847_v16, %s1890_s10  ;;  %1838 = vrot.lane.b32.xlu1 %v1852_v20, %s1889_s9  ;;  %v1772_v16 = vpack.c.bf16 %v869_v15, %v868_v14 }
  0xf3   : > { %1741 = vmatprep.subr.bf16.mxu1 %v1740_v21 }
  0xf4   : > { %1743 = vmatpush3.bf16.msra.mxu1 %v1740_v21 }
  0xf6   : > { %1843 = vrot.lane.b32.xlu1 %v1842_v12, %s1890_s10  ;;  %699 = vrot.lane.b32.xlu0 %v1974_v24, %s1889_s9  ;;  %v867_v12 = vld [vmem:[%s2296_s4 + $0x8] sm:$0xff] }
  0xf7   : > { %1602 = vmatmul.mubr.msk.f32.vlgmr.msra.gmra.mrb[0].mxu1 %vm386_vm1, %v375_v22  ;;  %v1768_v13 = vpack.c.bf16 %v867_v12, %v866_v11 }
  0xf8   : > { %1604 = vmatprep.mubr.msk.f32.mxu1 %vm386_vm1, %v376_v23 }
  0xfa   : > { %1853 = vrot.lane.b32.xlu1 %v1852_v20, %s1890_s10  ;;  %703 = vrot.lane.b32.xlu0 %v1986_v26, %s1889_s9 }
  0xfb   : > { %1605 = vmatmul.mubr.msk.f32.gmra.mrb[2].mxu1 %vm386_vm1, %v377_v25 }
  0xfc   : > { %1607 = vmatprep.mubr.msk.f32.mxu1 %vm386_vm1, %v378_v28  ;;  %v1465_v28 = vld [vmem:[%s2296_s4 + $0x28] sm:$0xff] }
  0xfe   : > { %701 = vrot.lane.b32.xlu1 %v2003_v29, %s1889_s9  ;;  %707 = vrot.lane.b32.xlu0 %v2014_v31, %s1889_s9 }
  0xff   : > { %1608 = vmatmul.mubr.msk.f32.gmra.mrb[4].mxu1 %vm386_vm1, %v379_v30 }
 0x100   : > { %1643 = vmatprep.mubr.msk.f32.mxu1 %vm386_vm1, %v2019_v32 }
 0x102   : > { %705 = vrot.lane.b32.xlu1 %v2027_v33, %s1889_s9  ;;  %537 = vrot.lane.b32.xlu0 %v1974_v24, %s1890_s10 }
 0x106   : > { %709 = vrot.lane.b32.xlu1 %v2038_v34, %s1889_s9  ;;  %541 = vrot.lane.b32.xlu0 %v1986_v26, %s1890_s10 }
 0x10a   : > { %539 = vrot.lane.b32.xlu1 %v2003_v29, %s1890_s10  ;;  %545 = vrot.lane.b32.xlu0 %v2014_v31, %s1890_s10 }
 0x10e   : > { %543 = vrot.lane.b32.xlu1 %v2027_v33, %s1890_s10 }
 0x112   : > { %547 = vrot.lane.b32.xlu1 %v2038_v34, %s1890_s10  ;;  %s251_s10 = scalar_lea.vmem %s2298_s6, %s1814_s27 }
 0x15c   : > { %v1829_v35 = vpop.permute.xlu0 %1828 }
 0x15d   : > { %v1831_v36 = vunpack.i.h.bf16 %v1829_v35  ;;  %v1830_v37 = vunpack.i.l.bf16 %v1829_v35 }
 0x15f   : > { %v1756_v38 = vpack.c.bf16 %v1831_v36, %v1830_v37 }
 0x160   : > { %v1834_v39 = vpop.permute.xlu0 %1833 }
 0x161   : > { %v1836_v40 = vunpack.i.h.bf16 %v1834_v39  ;;  %v1835_v41 = vunpack.i.l.bf16 %v1834_v39  ;;  %1757 = vmatprep.subr.bf16.mxu1 %v1756_v38 }
 0x162   : > { %1759 = vmatpush3.bf16.msra.mxu1 %v1756_v38 }
 0x163   : > { %v1760_v42 = vpack.c.bf16 %v1836_v40, %v1835_v41 }
 0x164   : > { %v1839_v43 = vpop.permute.xlu1 %1838  ;;  %v1849_v46 = vpop.permute.xlu0 %1848 }
 0x165   : > { %v1841_v44 = vunpack.i.h.bf16 %v1839_v43  ;;  %v1840_v45 = vunpack.i.l.bf16 %v1839_v43  ;;  %1761 = vmatprep.subr.bf16.mxu1 %v1760_v42  ;;  %v1851_v49 = vunpack.i.h.bf16 %v1849_v46  ;;  %v1850_v50 = vunpack.i.l.bf16 %v1849_v46 }
 0x166   : > { %1763 = vmatpush3.bf16.msra.mxu1 %v1760_v42 }
 0x167   : > { %v1764_v47 = vpack.c.bf16 %v1841_v44, %v1840_v45  ;;  %v1748_v57 = vpack.c.bf16 %v1851_v49, %v1850_v50 }
 0x168   : > { %v1844_v48 = vpop.permute.xlu1 %1843  ;;  %v700_v18 = vpop.permute.xlu0 %699 }
 0x169   : > { %v1846_v51 = vunpack.i.h.bf16 %v1844_v48  ;;  %v1845_v52 = vunpack.i.l.bf16 %v1844_v48  ;;  %1765 = vmatprep.subr.bf16.mxu1 %v1764_v47 }
 0x16a   : > { %1767 = vmatpush3.bf16.msra.mxu1 %v1764_v47 }
 0x16b   : > { %v1744_v54 = vpack.c.bf16 %v1846_v51, %v1845_v52 }
 0x16c   : > { %v1854_v56 = vpop.permute.xlu1 %1853  ;;  %v704_v23 = vpop.permute.xlu0 %703 }
 0x16d   : > { %v1856_v58 = vunpack.i.h.bf16 %v1854_v56  ;;  %v1855_v59 = vunpack.i.l.bf16 %v1854_v56  ;;  %1745 = vmatprep.subr.bf16.mxu0 %v1744_v54  ;;  %1644 = vmatmul.mubr.msk.f32.vlgmr.msra.gmra.mrb[6].mxu1 %vm386_vm1, %v2057_v53 }
 0x16e   : > { %1747 = vmatpush3.bf16.msra.mxu0 %v1744_v54  ;;  %1646 = vmatprep.mubr.msk.f32.mxu1 %vm386_vm1, %v2062_v55 }
 0x16f   : > { %1749 = vmatprep.subr.bf16.mxu0 %v1748_v57  ;;  %v1752_v62 = vpack.c.bf16 %v1856_v58, %v1855_v59 }
 0x170   : > { %v702_v17 = vpop.permute.xlu1 %701  ;;  %v708_v40 = vpop.permute.xlu0 %707 }
 0x171   : > { %1647 = vmatmul.mubr.msk.f32.gmra.mrb[8].mxu1 %vm386_vm1, %v2071_v60 }
 0x172   : > { %1751 = vmatpush3.bf16.msra.mxu0 %v1748_v57  ;;  %1649 = vmatprep.mubr.msk.f32.mxu1 %vm386_vm1, %v2076_v61 }
 0x173   : > { %1753 = vmatprep.subr.bf16.mxu0 %v1752_v62 }
 0x174   : > { %v706_v20 = vpop.permute.xlu1 %705  ;;  %v538_v59 = vpop.permute.xlu0 %537 }
 0x175   : > { %1650 = vmatmul.mubr.msk.f32.gmra.mrb[10].mxu1 %vm386_vm1, %v2085_v63 }
 0x176   : > { %1755 = vmatpush3.bf16.msra.mxu0 %v1752_v62  ;;  %1681 = vmatprep.mubr.msk.f32.mxu1 %vm386_vm1, %v1991_v27  ;;  %v1464_v27 = vld [vmem:[%s2296_s4 + $0x20] sm:$0xff] }
 0x177   : > { %1769 = vmatprep.subr.bf16.mxu0 %v1768_v13  ;;  %v2156_v35 = vpack.c.bf16 %v1465_v28, %v1464_v27 }
 0x178   : > { %v710_v39 = vpop.permute.xlu1 %709  ;;  %v542_v11 = vpop.permute.xlu0 %541 }
 0x179   : > { %1623 = vmatmul.mubr.msk.f32.vlgmr.msra.gmra.mrb[6].mxu0 %vm386_vm1, %v2092_v0 }
 0x17a   : > { %1625 = vmatprep.mubr.msk.f32.mxu0 %vm386_vm1, %v2099_v1  ;;  %1771 = vmatpush3.bf16.msra.mxu0 %v1768_v13 }
 0x17b   : > { %1773 = vmatprep.subr.bf16.mxu0 %v1772_v16 }
 0x17c   : > { %v540_v62 = vpop.permute.xlu1 %539 }
 0x17d   : > { %1626 = vmatmul.mubr.msk.f32.gmra.mrb[8].mxu0 %vm386_vm1, %v2108_v2 }
 0x17e   : > { %1628 = vmatprep.mubr.msk.f32.mxu0 %vm386_vm1, %v2113_v3  ;;  %1775 = vmatpush3.bf16.msra.mxu0 %v1772_v16 }
 0x17f   : > { %1789 = vmatprep.subr.bf16.mxu0 %v2156_v35 }
 0x180   : > { %v544_v13 = vpop.permute.xlu1 %543 }
 0x181   : > { %1629 = vmatmul.mubr.msk.f32.gmra.mrb[10].mxu0 %vm386_vm1, %v2122_v4 }
 0x1ca   : > { %v2126_v5 = vpop.f32.mrb[0].mxu1 }
 0x1cb   : > { %v2128_v6 = vpop.f32.mrb[1].mxu1 }
 0x1ce   : > { %v2130_v7 = vpop.f32.mrb[2].mxu1 }
 0x1cf   : > { %v2132_v8 = vpop.f32.mrb[3].mxu1 }
 0x1d2   : > { %v2134_v9 = vpop.f32.mrb[4].mxu1 }
 0x1d3   : > { %v2136_v10 = vpop.f32.mrb[5].mxu1 }
 0x240   : > { %v1645_v19 = vpop.f32.mrb[6].mxu1 }
 0x241   : > { %v807_v21 = vadd.f32 %v1645_v19, %v702_v17  ;;  %v801_v22 = vpop.f32.mrb[7].mxu1  ;;  %v546_v17 = vpop.permute.xlu0 %545 }
 0x242   : > { %v802_v25 = vadd.f32 %v801_v22, %v700_v18  ;;  %v548_v18 = vpop.permute.xlu1 %547  ;;  %v1466_v22 = vld [vmem:[%s2296_s4 + $0x30] sm:$0xff] }
 0x243   : > { %1857 = vtanh.f32 %v807_v21 }
 0x244   : > { %1859 = vtanh.f32 %v802_v25  ;;  %v1648_v30 = vpop.f32.mrb[8].mxu1 }
 0x245   : > { %v817_v36 = vadd.f32 %v1648_v30, %v706_v20  ;;  %v811_v37 = vpop.f32.mrb[9].mxu1 }
 0x246   : > { %v812_v38 = vadd.f32 %v811_v37, %v704_v23  ;;  %v1467_v23 = vld [vmem:[%s2296_s4 + $0x38] sm:$0xff] }
 0x247   : > { %1861 = vtanh.f32 %v817_v36  ;;  %v1792_v36 = vpack.c.bf16 %v1467_v23, %v1466_v22 }
 0x248   : > { %1863 = vtanh.f32 %v812_v38  ;;  %v1651_v41 = vpop.f32.mrb[10].mxu1 }
 0x249   : > { %v827_v42 = vadd.f32 %v1651_v41, %v710_v39  ;;  %v821_v43 = vpop.f32.mrb[11].mxu1 }
 0x24a   : > { %v822_v44 = vadd.f32 %v821_v43, %v708_v40 }
 0x24b   : > { %1865 = vtanh.f32 %v827_v42 }
 0x24c   : > { %1867 = vtanh.f32 %v822_v44  ;;  %v1624_v45 = vpop.f32.mrb[6].mxu0 }
 0x24d   : > { %v1858_v46 = vpop.eup %1857  ;;  %v639_v47 = vpop.f32.mrb[7].mxu0  ;;  %v645_v14 = vadd.f32 %v1624_v45, %v540_v62 }
 0x24e   : > { %v1860_v48 = vpop.eup %1859  ;;  %844 = vrot.lane.b32.xlu1 %v1858_v46, %s1891_s30  ;;  %v640_v12 = vadd.f32 %v639_v47, %v538_v59 }
 0x24f   : > { %842 = vrot.lane.b32.xlu0 %v1860_v48, %s1891_s30 }
 0x250   : > { %v1627_v49 = vpop.f32.mrb[8].mxu0  ;;  %1869 = vtanh.f32 %v640_v12 }
 0x251   : > { %v1862_v50 = vpop.eup %1861  ;;  %v649_v51 = vpop.f32.mrb[9].mxu0  ;;  %1871 = vtanh.f32 %v645_v14  ;;  %v655_v16 = vadd.f32 %v1627_v49, %v544_v13 }
 0x252   : > { %v1864_v52 = vpop.eup %1863  ;;  %848 = vrot.lane.b32.xlu1 %v1862_v50, %s1891_s30  ;;  %v650_v15 = vadd.f32 %v649_v51, %v542_v11 }
 0x253   : > { %846 = vrot.lane.b32.xlu0 %v1864_v52, %s1891_s30 }
 0x254   : > { %v1630_v54 = vpop.f32.mrb[10].mxu0  ;;  %1873 = vtanh.f32 %v650_v15 }
 0x255   : > { %v1866_v56 = vpop.eup %1865  ;;  %v659_v57 = vpop.f32.mrb[11].mxu0  ;;  %1875 = vtanh.f32 %v655_v16  ;;  %v665_v20 = vadd.f32 %v1630_v54, %v548_v18 }
 0x256   : > { %v1868_v58 = vpop.eup %1867  ;;  %852 = vrot.lane.b32.xlu1 %v1866_v56, %s1891_s30  ;;  %v660_v19 = vadd.f32 %v659_v57, %v546_v17 }
 0x257   : > { %850 = vrot.lane.b32.xlu0 %v1868_v58, %s1891_s30 }
 0x258   : > { %1877 = vtanh.f32 %v660_v19 }
 0x259   : > { %1879 = vtanh.f32 %v665_v20  ;;  %v989_v20 = vld [vmem:[%s2297_s5 + $0x28] sm:$0xff] }
 0x25a   : > { %v1870_v21 = vpop.eup %1869 }
 0x25b   : > { %v1872_v25 = vpop.eup %1871 }
 0x25e   : > { %v1874_v37 = vpop.eup %1873 }
 0x25f   : > { %v1876_v39 = vpop.eup %1875 }
 0x262   : > { %v1878_v43 = vpop.eup %1877 }
 0x263   : > { %v1880_v45 = vpop.eup %1879 }
 0x2c0   : > { %v845_v27 = vpop.permute.xlu1 %844 }
 0x2c1   : > { %v843_v28 = vpop.permute.xlu0 %842  ;;  %v861_v38 = vsel %vm260_vm0, %v1872_v25, %v845_v27 }
 0x2c2   : > { %v860_v30 = vsel %vm260_vm0, %v1870_v21, %v843_v28  ;;  %v988_v21 = vld [vmem:[%s2297_s5 + $0x20] sm:$0xff]  ;;  %v1475_v28 = vld [vmem:[%s2297_s5 + $0x38] sm:$0xff] }
 0x2c3   : > { %1660 = vmatprep.mubr.msk.f32.mxu0 %vm870_vm2, %v860_v30 }
 0x2c4   : > { %v849_v40 = vpop.permute.xlu1 %848  ;;  %1661 = vmatmul.mubr.msk.f32.vlgmr.msra.gmra.mrb[12].mxu0 %vm870_vm2, %v861_v38 }
 0x2c5   : > { %1791 = vmatpush3.bf16.msra.mxu0 %v2156_v35  ;;  %v847_v41 = vpop.permute.xlu0 %846  ;;  %v863_v44 = vsel %vm260_vm0, %v1876_v39, %v849_v40 }
 0x2c6   : > { %v862_v42 = vsel %vm260_vm0, %v1874_v37, %v847_v41  ;;  %1793 = vmatprep.subr.bf16.mxu0 %v1792_v36  ;;  %v1477_v37 = vld [vmem:[%s2297_s5 + $0x48] sm:$0xff]  ;;  %v1476_v41 = vld [vmem:[%s2297_s5 + $0x40] sm:$0xff] }
 0x2c7   : > { %1663 = vmatprep.mubr.msk.f32.mxu0 %vm870_vm2, %v862_v42 }
 0x2c8   : > { %v853_v46 = vpop.permute.xlu1 %852  ;;  %1664 = vmatmul.mubr.msk.f32.gmra.mrb[14].mxu0 %vm870_vm2, %v863_v44 }
 0x2c9   : > { %v851_v47 = vpop.permute.xlu0 %850  ;;  %1795 = vmatpush3.bf16.msra.mxu0 %v1792_v36  ;;  %v865_v49 = vsel %vm260_vm0, %v1880_v45, %v853_v46  ;;  %v1479_v46 = vld [vmem:[%s2297_s5 + $0x58] sm:$0xff] }
 0x2ca   : > { %v864_v48 = vsel %vm260_vm0, %v1878_v43, %v851_v47 }
 0x2cb   : > { %1666 = vmatprep.mubr.msk.f32.mxu0 %vm870_vm2, %v864_v48 }
 0x2cc   : > { %1667 = vmatmul.mubr.msk.f32.gmra.mrb[16].mxu0 %vm870_vm2, %v865_v49 }
 0x2cd   : > { %1698 = vmatprep.mubr.msk.f32.mxu0 %vm870_vm2, %v860_v30  ;;  %v1474_v30 = vld [vmem:[%s2297_s5 + $0x30] sm:$0xff] }
 0x2d0   : > { %1699 = vmatmul.mubr.msk.f32.vlgmr.msra.gmra.mrb[18].mxu0 %vm870_vm2, %v861_v38 }
 0x2d1   : > { %1701 = vmatprep.mubr.msk.f32.mxu0 %vm870_vm2, %v862_v42 }
 0x2d4   : > { %1702 = vmatmul.mubr.msk.f32.gmra.mrb[20].mxu0 %vm870_vm2, %v863_v44 }
 0x2d5   : > { %1704 = vmatprep.mubr.msk.f32.mxu0 %vm870_vm2, %v864_v48  ;;  %v1478_v48 = vld [vmem:[%s2297_s5 + $0x50] sm:$0xff] }
 0x2d8   : > { %1705 = vmatmul.mubr.msk.f32.gmra.mrb[22].mxu0 %vm870_vm2, %v865_v49 }
 0x2d9   : > { %1719 = vmatprep.mubr.msk.f32.mxu0 %vm386_vm1, %v2019_v32 }
 0x397   : > { %v1662_v35 = vpop.f32.mrb[12].mxu0 }
 0x398   : > { %v955_v50 = vpop.f32.mrb[13].mxu0 }
 0x399   : > { %v1776_v51 = vpack.c.bf16 %v1662_v35, %v955_v50 }
 0x39b   : > { %v1665_v52 = vpop.f32.mrb[14].mxu0  ;;  %1777 = vmatprep.subr.bf16.mxu1 %v1776_v51 }
 0x39c   : > { %v965_v54 = vpop.f32.mrb[15].mxu0  ;;  %1779 = vmatpush3.bf16.msra.mxu1 %v1776_v51 }
 0x39d   : > { %v1780_v56 = vpack.c.bf16 %v1665_v52, %v965_v54 }
 0x39f   : > { %v1668_v57 = vpop.f32.mrb[16].mxu0  ;;  %1781 = vmatprep.subr.bf16.mxu1 %v1780_v56 }
 0x3a0   : > { %v975_v58 = vpop.f32.mrb[17].mxu0  ;;  %1783 = vmatpush3.bf16.msra.mxu1 %v1780_v56 }
 0x3a1   : > { %v1784_v59 = vpack.c.bf16 %v1668_v57, %v975_v58 }
 0x3a3   : > { %1785 = vmatprep.subr.bf16.mxu1 %v1784_v59  ;;  %v1700_v62 = vpop.f32.mrb[18].mxu0 }
 0x3a4   : > { %1787 = vmatpush3.bf16.msra.mxu1 %v1784_v59  ;;  %v1156_v11 = vpop.f32.mrb[19].mxu0  ;;  %v477_v59 = vadd.f32 %v2126_v5, %v2003_v29  ;;  %v487_v29 = vadd.f32 %v2130_v7, %v2027_v33  ;;  %v482_v5 = vadd.f32 %v2132_v8, %v1986_v26  ;;  %v497_v33 = vadd.f32 %v2134_v9, %v2038_v34 }
 0x3a5   : > { %v1796_v12 = vpack.c.bf16 %v1700_v62, %v1156_v11  ;;  %v472_v62 = vadd.f32 %v2128_v6, %v1974_v24  ;;  %v492_v26 = vadd.f32 %v2136_v10, %v2014_v31 }
 0x3a7   : > { %1682 = vmatmul.mubr.msk.f32.vlgmr.msra.gmra.mrb[12].mxu1 %vm386_vm1, %v2092_v0  ;;  %v1703_v32 = vpop.f32.mrb[20].mxu0  ;;  %1797 = vmatprep.subr.bf16.mxu0 %v1796_v12  ;;  %v985_v0 = vld [vmem:[%s2297_s5 + $0x8] sm:$0xff] }
 0x3a8   : > { %1808 = vmatprep.subr.bf16.mxu1 %v1796_v12  ;;  %v1166_v13 = vpop.f32.mrb[21].mxu0  ;;  %1799 = vmatpush3.bf16.msra.mxu0 %v1796_v12 }
 0x3a9   : > { %v1800_v14 = vpack.c.bf16 %v1703_v32, %v1166_v13  ;;  %1811 = vmatpush3.bf16.msra.mxu1 %v1796_v12  ;;  %1684 = vmatprep.mubr.msk.f32.mxu1 %vm386_vm1, %v2099_v1 }
 0x3ab   : > { %1685 = vmatmul.mubr.msk.f32.gmra.mrb[14].mxu1 %vm386_vm1, %v2108_v2  ;;  %v1706_v15 = vpop.f32.mrb[22].mxu0  ;;  %1801 = vmatprep.subr.bf16.mxu0 %v1800_v14 }
 0x3ac   : > { %1809 = vmatprep.subr.bf16.mxu1 %v1800_v14  ;;  %v1176_v16 = vpop.f32.mrb[23].mxu0  ;;  %1803 = vmatpush3.bf16.msra.mxu0 %v1800_v14 }
 0x3ad   : > { %v1804_v17 = vpack.c.bf16 %v1706_v15, %v1176_v16  ;;  %1812 = vmatpush3.bf16.msra.mxu1 %v1800_v14  ;;  %1687 = vmatprep.mubr.msk.f32.mxu1 %vm386_vm1, %v2113_v3 }
 0x3af   : > { %1688 = vmatmul.mubr.msk.f32.gmra.mrb[16].mxu1 %vm386_vm1, %v2122_v4  ;;  %1805 = vmatprep.subr.bf16.mxu0 %v1804_v17 }
 0x3b0   : > { %1810 = vmatprep.subr.bf16.mxu1 %v1804_v17  ;;  %1807 = vmatpush3.bf16.msra.mxu0 %v1804_v17 }
 0x3b1   : > { %1813 = vmatpush3.bf16.msra.mxu1 %v1804_v17  ;;  %1722 = vmatprep.mubr.msk.f32.mxu1 %vm386_vm1, %v2062_v55  ;;  %v984_v55 = vld [vmem:[%s2297_s5] sm:$0xff] }
 0x3b3   : > { %1720 = vmatmul.mubr.msk.f32.vlgmr.msra.gmra.mrb[24].mxu0 %vm386_vm1, %v2057_v53 }
 0x3b4   : > { %1723 = vmatmul.mubr.msk.f32.vlgmr.msra.gmra.mrb[18].mxu1 %vm386_vm1, %v2071_v60  ;;  %v987_v60 = vld [vmem:[%s2297_s5 + $0x18] sm:$0xff] }
 0x3b5   : > { %1725 = vmatprep.mubr.msk.f32.mxu1 %vm386_vm1, %v2076_v61  ;;  %v986_v61 = vld [vmem:[%s2297_s5 + $0x10] sm:$0xff] }
 0x3b8   : > { %1726 = vmatmul.mubr.msk.f32.gmra.mrb[20].mxu1 %vm386_vm1, %v2085_v63 }
 0x47a   : > { %v1683_v1 = vpop.f32.mrb[12].mxu1 }
 0x47b   : > { %v1062_v2 = vadd.f32 %v1683_v1, %v985_v0  ;;  %v1056_v53 = vpop.f32.mrb[13].mxu1 }
 0x47c   : > { %v1057_v3 = vadd.f32 %v1056_v53, %v984_v55 }
 0x47d   : > { %1295 = vrot.lane.b32.xlu1 %v1062_v2, %s1891_s30 }
 0x47e   : > { %v1686_v63 = vpop.f32.mrb[14].mxu1  ;;  %1293 = vrot.lane.b32.xlu0 %v1057_v3, %s1891_s30 }
 0x47f   : > { %v1072_v4 = vadd.f32 %v1686_v63, %v987_v60  ;;  %v1066_v18 = vpop.f32.mrb[15].mxu1 }
 0x480   : > { %v1067_v19 = vadd.f32 %v1066_v18, %v986_v61 }
 0x481   : > { %1299 = vrot.lane.b32.xlu1 %v1072_v4, %s1891_s30 }
 0x482   : > { %v1689_v22 = vpop.f32.mrb[16].mxu1  ;;  %1297 = vrot.lane.b32.xlu0 %v1067_v19, %s1891_s30 }
 0x483   : > { %v1082_v23 = vadd.f32 %v1689_v22, %v989_v20  ;;  %v1076_v25 = vpop.f32.mrb[17].mxu1 }
 0x484   : > { %v1077_v27 = vadd.f32 %v1076_v25, %v988_v21 }
 0x485   : > { %1303 = vrot.lane.b32.xlu1 %v1082_v23, %s1891_s30 }
 0x486   : > { %v1721_v36 = vpop.f32.mrb[24].mxu0  ;;  %1301 = vrot.lane.b32.xlu0 %v1077_v27, %s1891_s30 }
 0x487   : > { %v1264_v38 = vadd.f32 %v1721_v36, %v1475_v28  ;;  %v1258_v39 = vpop.f32.mrb[25].mxu0  ;;  %v1724_v40 = vpop.f32.mrb[18].mxu1 }
 0x488   : > { %v1259_v42 = vadd.f32 %v1474_v30, %v1258_v39  ;;  %v1268_v43 = vpop.f32.mrb[19].mxu1  ;;  %v1274_v44 = vadd.f32 %v1724_v40, %v1477_v37 }
 0x489   : > { %1319 = vrot.lane.b32.xlu1 %v1264_v38, %s1892_s13  ;;  %v1269_v45 = vadd.f32 %v1476_v41, %v1268_v43 }
 0x48a   : > { %1317 = vrot.lane.b32.xlu0 %v1259_v42, %s1892_s13 }
 0x48b   : > { %v1727_v47 = vpop.f32.mrb[20].mxu1 }
 0x48c   : > { %v1278_v49 = vpop.f32.mrb[21].mxu1  ;;  %v1284_v35 = vadd.f32 %v1727_v47, %v1479_v46 }
 0x48d   : > { %1323 = vrot.lane.b32.xlu1 %v1274_v44, %s1892_s13  ;;  %v1279_v50 = vadd.f32 %v1478_v48, %v1278_v49 }
 0x48e   : > { %1321 = vrot.lane.b32.xlu0 %v1269_v45, %s1892_s13 }
 0x491   : > { %1327 = vrot.lane.b32.xlu1 %v1284_v35, %s1892_s13 }
 0x492   : > { %1325 = vrot.lane.b32.xlu0 %v1279_v50, %s1892_s13 }
 0x4ef   : > { %v1296_v51 = vpop.permute.xlu1 %1295 }
 0x4f0   : > { %v1294_v52 = vpop.permute.xlu0 %1293  ;;  %v1336_v11 = vsel %vm260_vm0, %v477_v59, %v1296_v51 }
 0x4f1   : > { %v1335_v32 = vsel %vm260_vm0, %v472_v62, %v1294_v52 }
 0x4f3   : > { %v1300_v54 = vpop.permute.xlu1 %1299 }
 0x4f4   : > { %v1298_v56 = vpop.permute.xlu0 %1297  ;;  %v1338_v6 = vsel %vm260_vm0, %v487_v29, %v1300_v54 }
 0x4f5   : > { %v1337_v16 = vsel %vm260_vm0, %v482_v5, %v1298_v56 }
 0x4f7   : > { %v1304_v57 = vpop.permute.xlu1 %1303 }
 0x4f8   : > { %v1302_v58 = vpop.permute.xlu0 %1301  ;;  %v1340_v8 = vsel %vm260_vm0, %v497_v33, %v1304_v57 }
 0x4f9   : > { %v1339_v1 = vsel %vm260_vm0, %v492_v26, %v1302_v58 }
 0x4fb   : > { %v1320_v12 = vpop.permute.xlu1 %1319 }
 0x4fc   : > { %v1342_v13 = vsel %vm386_vm1, %v1336_v11, %v1320_v12  ;;  %v1318_v14 = vpop.permute.xlu0 %1317 }
 0x4fd   : > { %1349 = vst.msk [vmem:[%s251_s10 + $0x8] sm:$0xff] %vm1347_vm3, %v1342_v13  ;;  %v1341_v24 = vsel %vm386_vm1, %v1335_v32, %v1318_v14 }
 0x4fe   : > { %1348 = vst.msk [vmem:[%s251_s10] sm:$0xff] %vm1347_vm3, %v1341_v24 }
 0x4ff   : > { %v1324_v15 = vpop.permute.xlu1 %1323 }
 0x500   : > { %v1344_v17 = vsel %vm386_vm1, %v1338_v6, %v1324_v15  ;;  %v1322_v0 = vpop.permute.xlu0 %1321 }
 0x501   : > { %1351 = vst.msk [vmem:[%s251_s10 + $0x18] sm:$0xff] %vm1347_vm3, %v1344_v17  ;;  %v1343_v7 = vsel %vm386_vm1, %v1337_v16, %v1322_v0 }
 0x502   : > { %1350 = vst.msk [vmem:[%s251_s10 + $0x10] sm:$0xff] %vm1347_vm3, %v1343_v7 }
 0x503   : > { %v1328_v55 = vpop.permute.xlu1 %1327 }
 0x504   : > { %v1346_v2 = vsel %vm386_vm1, %v1340_v8, %v1328_v55  ;;  %v1326_v53 = vpop.permute.xlu0 %1325 }
 0x505   : > { %1353 = vst.msk [vmem:[%s251_s10 + $0x28] sm:$0xff] %vm1347_vm3, %v1346_v2  ;;  %v1345_v34 = vsel %vm386_vm1, %v1339_v1, %v1326_v53 }
 0x506   : > { %1352 = vst.msk [vmem:[%s251_s10 + $0x20] sm:$0xff] %vm1347_vm3, %v1345_v34 }
 0x507 PF: > { %s16_s21 = sadd.s32 1, %s1887_s21  }
 0x508   : > { %p13_p4 = scmp.ge.s32.totalorder %s16_s21, 4  }
 0x50a   :  { %15 = sbr.rel (!%p13_p4) target bundleno = 1 (0x1), region = 78 }

</bundles_post_ra>
